<compile_context>
chip_gen: v5e
topology: v5e:2x2
jax: 0.10.0
libtpu: 0.0.40
codegen_flags: <defaults>
</compile_context>

<pallas_src>
import functools

import jax
import jax.numpy as jnp
from jax import lax
from jax.experimental import pallas as pl
from jax.experimental.pallas import tpu as pltpu


# ---------------------------------------------------------------------------
# Hardware-aware sizing helpers
# ---------------------------------------------------------------------------

def _vmem_capacity_bytes():
    """Per-TensorCore VMEM capacity; conservative 64 MiB fallback (v7x)."""
    try:
        info = pltpu.get_tpu_info()
        cap = int(getattr(info, "vmem_capacity_bytes", 0))
        if cap > 0:
            return cap
    except Exception:
        pass
    return 64 << 20


def _budget_and_limit():
    cap = _vmem_capacity_bytes()
    tile_budget = int(cap * 0.60)      # what the tile-size search may spend
    vmem_limit = int(cap * 0.90)       # Mosaic scoped-VMEM limit
    return tile_budget, vmem_limit


def _pick_tb(G, wp2, c2, c2out, in_item, w_item, out_item, tile_budget,
             max_rows=4096):
    """Rows-of-h-pairs per grid step for the fused path (dtype-accurate)."""
    per_row = (4 * c2 * in_item        # input slab (2 parity rows, dbl-buffered)
               + 2 * c2out * out_item  # output slab (dbl-buffered)
               + 4 * c2 * 4            # fp32 temporaries (top/bot, normalized)
               + 2 * c2 * w_item       # MXU-cast operands
               + 2 * c2out * 4)        # fp32 accumulator + cast copy
    fixed = 2 * c2 * c2out * w_item + c2out * 4 + (2 << 20)
    rows = max((tile_budget - fixed) // per_row, wp2)
    rows = int(min(rows, max_rows))
    tb = max(1, rows // wp2)
    if G >= 8:
        # >=4 grid steps: v7x shards the parallel axis over 2 TCs and each core
        # still needs >=2 steps for prefetch/writeback overlap.
        tb = min(tb, pl.cdiv(G, 4))
    return max(1, min(tb, G))


def _pick_rows(N, c4, c2out, in_item, w_item, out_item, tile_budget,
               max_rows=4096):
    """Token rows per grid step for the 2-D fallback path."""
    per_row = (2 * c4 * in_item + 2 * c2out * out_item
               + 2 * c4 * 4 + c4 * w_item + 2 * c2out * 4)
    fixed = c4 * c2out * w_item + c2out * 4 + (2 << 20)
    rows = max((tile_budget - fixed) // per_row, 8)
    rows = int(min(rows, max_rows))
    if N >= 8:
        rows = min(rows, max(8, pl.cdiv(N, 4)))   # >=4 grid steps when possible
        rows = max(8, min(rows, N))
        rows = (rows // 8) * 8                    # sublane-aligned block rows
        return rows
    return N


# ---------------------------------------------------------------------------
# Kernels
# ---------------------------------------------------------------------------

def _merged_kernel(x_ref, wt_ref, wb_ref, b_ref, o_ref, *, eps, inv_4c):
    """Fused 2x2 gather + LayerNorm(4C) + Linear(4C->2C) (affine folded).

    x_ref : (tb, 2, Wp2, 2C)  parity-0 rows hold [x0|x2], parity-1 rows [x1|x3]
    wt_ref: (2C, 2Cout)       gamma-folded weight rows pairing with [x0|x2]
    wb_ref: (2C, 2Cout)       gamma-folded weight rows pairing with [x1|x3]
    b_ref : (1, 2Cout)        beta @ W
    o_ref : (tb, Wp2, 2Cout)
    """
    tb, _, wp2, c2 = x_ref.shape
    rows = tb * wp2

    # wp2 % 8 == 0 is guaranteed by the caller, so these reshapes are free
    # sublane re-labels (no relayout).
    top = x_ref[:, 0].reshape(rows, c2).astype(jnp.float32)   # [x0 | x2]
    bot = x_ref[:, 1].reshape(rows, c2).astype(jnp.float32)   # [x1 | x3]

    # One-pass LayerNorm statistics over the virtual 4C feature axis.
    s1 = jnp.sum(top, axis=-1, keepdims=True) + jnp.sum(bot, axis=-1, keepdims=True)
    s2 = (jnp.sum(top * top, axis=-1, keepdims=True)
          + jnp.sum(bot * bot, axis=-1, keepdims=True))
    mean = s1 * inv_4c
    var = jnp.maximum(s2 * inv_4c - mean * mean, 0.0)
    inv = lax.rsqrt(var + eps)
    shift = -mean * inv

    mxu_dtype = wt_ref.dtype                    # bf16 on request, else fp32
    xt = (top * inv + shift).astype(mxu_dtype)
    xb = (bot * inv + shift).astype(mxu_dtype)

    acc = jnp.dot(xt, wt_ref[...], preferred_element_type=jnp.float32)
    acc = acc + jnp.dot(xb, wb_ref[...], preferred_element_type=jnp.float32)
    acc = acc + b_ref[...]
    o_ref[...] = acc.reshape(tb, wp2, -1).astype(o_ref.dtype)


def _concat_kernel(x_ref, w_ref, b_ref, o_ref, *, eps, inv_4c):
    """LayerNorm(4C) + Linear(4C->2C) over an already-gathered (rows, 4C) slab."""
    x = x_ref[...].astype(jnp.float32)
    s1 = jnp.sum(x, axis=-1, keepdims=True)
    s2 = jnp.sum(x * x, axis=-1, keepdims=True)
    mean = s1 * inv_4c
    var = jnp.maximum(s2 * inv_4c - mean * mean, 0.0)
    inv = lax.rsqrt(var + eps)
    xn = ((x - mean) * inv).astype(w_ref.dtype)
    acc = jnp.dot(xn, w_ref[...], preferred_element_type=jnp.float32)
    o_ref[...] = (acc + b_ref[...]).astype(o_ref.dtype)


# ---------------------------------------------------------------------------
# pallas_call wrappers
# ---------------------------------------------------------------------------

def _fused_call(xv, w_top, w_bot, bias, *, eps, c4, out_dtype):
    G, _, wp2, c2 = xv.shape
    c2out = w_top.shape[1]
    tile_budget, vmem_limit = _budget_and_limit()
    tb = _pick_tb(G, wp2, c2, c2out,
                  jnp.dtype(xv.dtype).itemsize,
                  jnp.dtype(w_top.dtype).itemsize,
                  jnp.dtype(out_dtype).itemsize,
                  tile_budget)
    kernel = functools.partial(_merged_kernel, eps=eps, inv_4c=1.0 / c4)
    return pl.pallas_call(
        kernel,
        out_shape=jax.ShapeDtypeStruct((G, wp2, c2out), out_dtype),
        grid=(pl.cdiv(G, tb),),
        in_specs=[
            pl.BlockSpec((tb, 2, wp2, c2), lambda i: (i, 0, 0, 0)),
            # Grid-invariant operands: single copy in VMEM, no double-buffering.
            pl.BlockSpec(memory_space=pltpu.MemorySpace.VMEM),
            pl.BlockSpec(memory_space=pltpu.MemorySpace.VMEM),
            pl.BlockSpec(memory_space=pltpu.MemorySpace.VMEM),
        ],
        out_specs=pl.BlockSpec((tb, wp2, c2out), lambda i: (i, 0, 0)),
        compiler_params=pltpu.CompilerParams(
            dimension_semantics=("parallel",),
            vmem_limit_bytes=vmem_limit,
        ),
    )(xv, w_top, w_bot, bias)


def _concat_call(xc, w_fold, bias, *, eps, c4, out_dtype):
    N = xc.shape[0]
    c2out = w_fold.shape[1]
    tile_budget, vmem_limit = _budget_and_limit()
    rows = _pick_rows(N, c4, c2out,
                      jnp.dtype(xc.dtype).itemsize,
                      jnp.dtype(w_fold.dtype).itemsize,
                      jnp.dtype(out_dtype).itemsize,
                      tile_budget)
    kernel = functools.partial(_concat_kernel, eps=eps, inv_4c=1.0 / c4)
    return pl.pallas_call(
        kernel,
        out_shape=jax.ShapeDtypeStruct((N, c2out), out_dtype),
        grid=(pl.cdiv(N, rows),),
        in_specs=[
            pl.BlockSpec((rows, c4), lambda i: (i, 0)),
            pl.BlockSpec(memory_space=pltpu.MemorySpace.VMEM),
            pl.BlockSpec(memory_space=pltpu.MemorySpace.VMEM),
        ],
        out_specs=pl.BlockSpec((rows, c2out), lambda i: (i, 0)),
        compiler_params=pltpu.CompilerParams(
            dimension_semantics=("parallel",),
            vmem_limit_bytes=vmem_limit,
        ),
    )(xc, w_fold, bias)


# ---------------------------------------------------------------------------
# Public forward pass (PatchMerging.forward equivalent)
# ---------------------------------------------------------------------------

def patch_merging(x, H, W, gamma, beta, w, *, eps=1e-5, use_bf16_matmul=None):
    """x: (B, H*W, C); gamma/beta: (4C,); w: (4C, 2C).
    Returns (B, ceil(H/2)*ceil(W/2), 2C)."""
    B, L, C = x.shape
    assert L == H * W, "input feature has wrong size"
    c2, c4 = 2 * C, 4 * C
    out_dtype = x.dtype

    if use_bf16_matmul is None:
        # Auto-enable bf16 MXU operands only for bf16 activations so the default
        # fp32 path stays bit-accurate.  On v5e (bf16-native MXU) pass True.
        use_bf16_matmul = (x.dtype == jnp.bfloat16)
    mxu_dtype = jnp.bfloat16 if use_bf16_matmul else jnp.float32

    # Fold the LayerNorm affine into the reduction (tiny host-side op):
    #   (LN(x)*gamma + beta) @ W = ((x-mu)*inv) @ (diag(gamma) @ W) + beta @ W
    gamma32 = gamma.astype(jnp.float32)
    beta32 = beta.astype(jnp.float32)
    w32 = w.astype(jnp.float32)
    w_fold = gamma32[:, None] * w32                         # (4C, 2C)
    bias = (beta32 @ w32).reshape(1, c2).astype(jnp.float32)

    # Module semantics: zero-pad to even H/W only when actually odd.
    Hp, Wp = H + (H % 2), W + (W % 2)
    Hp2, Wp2 = Hp // 2, Wp // 2

    xg = x.reshape(B, H, W, C)
    if Hp != H or Wp != W:
        xg = jnp.pad(xg, ((0, 0), (0, Hp - H), (0, Wp - W), (0, 0)))

    if Wp2 % 8 == 0:
        # Fully fused path: the 2x2 gather happens inside the pallas_call via a
        # metadata-only view; no extra HBM passes, no over-pad, no output slice.
        G = B * Hp2
        xv = xg.reshape(G, 2, Wp2, c2)      # free reshape of the contiguous array
        # PyTorch concat order is [x0|x1|x2|x3]; the kernel sees [x0|x2] (even h
        # row) and [x1|x3] (odd h row), so split the folded weight accordingly.
        w_top = jnp.concatenate([w_fold[0:C], w_fold[2 * C:3 * C]], axis=0)
        w_bot = jnp.concatenate([w_fold[C:2 * C], w_fold[3 * C:4 * C]], axis=0)
        out3d = _fused_call(xv, w_top.astype(mxu_dtype), w_bot.astype(mxu_dtype),
                            bias, eps=eps, c4=c4, out_dtype=out_dtype)
        return out3d.reshape(B, Hp2 * Wp2, c2)

    # Fallback (Wp2 not a multiple of 8, e.g. Swin widths giving Wp2=28/14/7):
    # the merged row axis cannot be re-labelled for free inside the kernel, so
    # let XLA build the (N, 4C) neighborhood concat in one fused gather pass and
    # run a plain 2-D LayerNorm+reduction Pallas kernel over it.
    # TODO(synk): fuse the gather for Wp2 % 8 != 0 too (needs an in-kernel
    # sublane relayout of the (tb, Wp2, 2C) slabs).
    x0 = xg[:, 0::2, 0::2, :]
    x1 = xg[:, 1::2, 0::2, :]
    x2 = xg[:, 0::2, 1::2, :]
    x3 = xg[:, 1::2, 1::2, :]
    xc = jnp.concatenate([x0, x1, x2, x3], axis=-1).reshape(B * Hp2 * Wp2, c4)
    out2d = _concat_call(xc, w_fold.astype(mxu_dtype), bias,
                         eps=eps, c4=c4, out_dtype=out_dtype)
    return out2d.reshape(B, Hp2 * Wp2, c2)


# ---------------------------------------------------------------------------
# Self-test
# ---------------------------------------------------------------------------

if __name__ == "__main__":
    # Make the pure-JAX reference numerically trustworthy on TPU.
    jax.config.update("jax_default_matmul_precision", "highest")

    key = jax.random.PRNGKey(0)
    kx, kw, kg, kb, kx2 = jax.random.split(key, 5)

    def reference(x, H, W, gamma, beta, w, eps=1e-5):
        B, L, C = x.shape
        xg = x.reshape(B, H, W, C)
        if (H % 2) or (W % 2):
            xg = jnp.pad(xg, ((0, 0), (0, H % 2), (0, W % 2), (0, 0)))
        x0 = xg[:, 0::2, 0::2, :]
        x1 = xg[:, 1::2, 0::2, :]
        x2 = xg[:, 0::2, 1::2, :]
        x3 = xg[:, 1::2, 1::2, :]
        xc = jnp.concatenate([x0, x1, x2, x3], -1).reshape(B, -1, 4 * C)
        mu = xc.mean(-1, keepdims=True)
        var = ((xc - mu) ** 2).mean(-1, keepdims=True)
        xn = (xc - mu) * jax.lax.rsqrt(var + eps) * gamma + beta
        return xn @ w

    # Case 1: even spatial dims -> fully fused path (Wp2 % 8 == 0).
    B, H, W, C = 2, 16, 16, 4
    x = jax.random.normal(kx, (B, H * W, C), dtype=jnp.float32)
    w = jax.random.normal(kw, (4 * C, 2 * C), dtype=jnp.float32) * 0.05
    gamma = 1.0 + 0.01 * jax.random.normal(kg, (4 * C,), dtype=jnp.float32)
    beta = 0.01 * jax.random.normal(kb, (4 * C,), dtype=jnp.float32)

    out = patch_merging(x, H, W, gamma, beta, w)
    jax.block_until_ready(out)
    ref = reference(x, H, W, gamma, beta, w)
    assert out.shape == (B, (H // 2) * (W // 2), 2 * C)
    assert jnp.allclose(out, ref, atol=2e-5, rtol=2e-5), \
        float(jnp.max(jnp.abs(out - ref)))

    # Case 2: odd spatial dims -> F.pad semantics + 2-D fallback (Wp2 % 8 != 0),
    # including a partial tail grid block.
    H2, W2 = 7, 9
    x2 = jax.random.normal(kx2, (1, H2 * W2, C), dtype=jnp.float32)
    out2 = patch_merging(x2, H2, W2, gamma, beta, w)
    jax.block_until_ready(out2)
    ref2 = reference(x2, H2, W2, gamma, beta, w)
    assert out2.shape == (1, ((H2 + 1) // 2) * ((W2 + 1) // 2), 2 * C)
    assert jnp.allclose(out2, ref2, atol=2e-5, rtol=2e-5), \
        float(jnp.max(jnp.abs(out2 - ref2)))

    # Case 3: bf16 MXU operands with fp32 accumulation (recommended on v5e).
    out3 = patch_merging(x, H, W, gamma, beta, w, use_bf16_matmul=True)
    jax.block_until_ready(out3)
    assert jnp.allclose(out3, ref, atol=5e-2, rtol=5e-2), \
        float(jnp.max(jnp.abs(out3 - ref)))

    print("KERNEL_OK")
</pallas_src>

<mosaic_0001>
module attributes {stable_mosaic.version = 11 : i64} {
  func.func @_merged_kernel(%arg0: i32, %arg1: memref<4x2x8x8xf32, #tpu.memory_space<vmem>>, %arg2: memref<8x8xf32, #tpu.memory_space<vmem>>, %arg3: memref<8x8xf32, #tpu.memory_space<vmem>>, %arg4: memref<1x8xf32, #tpu.memory_space<vmem>>, %arg5: memref<4x8x8xf32, #tpu.memory_space<vmem>>) attributes {dimension_semantics = [#tpu.dimension_semantics<parallel>], iteration_bounds = array<i64: 4>, scalar_prefetch = 0 : i64, scratch_operands = 0 : i64, tpu.core_type = #tpu.core_type<tc>, window_params = [{transform_indices = @transform_0, window_bounds = array<i64: 4, 2, 8, 8>}, {pipeline_mode = #tpu.pipeline_mode<synchronous>, transform_indices = @transform_1, window_bounds = array<i64: 8, 8>}, {pipeline_mode = #tpu.pipeline_mode<synchronous>, transform_indices = @transform_2, window_bounds = array<i64: 8, 8>}, {pipeline_mode = #tpu.pipeline_mode<synchronous>, transform_indices = @transform_3, window_bounds = array<i64: 1, 8>}, {transform_indices = @transform_4, window_bounds = array<i64: 4, 8, 8>}]} {
    %c0 = arith.constant 0 : index
    %c0_0 = arith.constant 0 : index
    %c0_1 = arith.constant 0 : index
    %c0_2 = arith.constant 0 : index
    %0 = vector.load %arg1[%c0, %c0_0, %c0_1, %c0_2] : memref<4x2x8x8xf32, #tpu.memory_space<vmem>>, vector<4x1x8x8xf32>
    %1 = vector.shape_cast %0 : vector<4x1x8x8xf32> to vector<4x8x8xf32>
    %2 = vector.shape_cast %1 : vector<4x8x8xf32> to vector<32x8xf32>
    %c0_3 = arith.constant 0 : index
    %c1 = arith.constant 1 : index
    %c0_4 = arith.constant 0 : index
    %c0_5 = arith.constant 0 : index
    %3 = vector.load %arg1[%c0_3, %c1, %c0_4, %c0_5] : memref<4x2x8x8xf32, #tpu.memory_space<vmem>>, vector<4x1x8x8xf32>
    %4 = vector.shape_cast %3 : vector<4x1x8x8xf32> to vector<4x8x8xf32>
    %5 = vector.shape_cast %4 : vector<4x8x8xf32> to vector<32x8xf32>
    %cst = arith.constant dense<0.000000e+00> : vector<32xf32>
    %6 = vector.multi_reduction <add>, %2, %cst [1] : vector<32x8xf32> to vector<32xf32>
    %7 = vector.shape_cast %6 : vector<32xf32> to vector<32x1xf32>
    %cst_6 = arith.constant dense<0.000000e+00> : vector<32xf32>
    %8 = vector.multi_reduction <add>, %5, %cst_6 [1] : vector<32x8xf32> to vector<32xf32>
    %9 = vector.shape_cast %8 : vector<32xf32> to vector<32x1xf32>
    %10 = arith.addf %7, %9 : vector<32x1xf32>
    %11 = arith.mulf %2, %2 : vector<32x8xf32>
    %cst_7 = arith.constant dense<0.000000e+00> : vector<32xf32>
    %12 = vector.multi_reduction <add>, %11, %cst_7 [1] : vector<32x8xf32> to vector<32xf32>
    %13 = vector.shape_cast %12 : vector<32xf32> to vector<32x1xf32>
    %14 = arith.mulf %5, %5 : vector<32x8xf32>
    %cst_8 = arith.constant dense<0.000000e+00> : vector<32xf32>
    %15 = vector.multi_reduction <add>, %14, %cst_8 [1] : vector<32x8xf32> to vector<32xf32>
    %16 = vector.shape_cast %15 : vector<32xf32> to vector<32x1xf32>
    %17 = arith.addf %13, %16 : vector<32x1xf32>
    %cst_9 = arith.constant 6.250000e-02 : f32
    %18 = vector.broadcast %cst_9 : f32 to vector<32x1xf32>
    %19 = arith.mulf %10, %18 : vector<32x1xf32>
    %cst_10 = arith.constant 6.250000e-02 : f32
    %20 = vector.broadcast %cst_10 : f32 to vector<32x1xf32>
    %21 = arith.mulf %17, %20 : vector<32x1xf32>
    %22 = arith.mulf %19, %19 : vector<32x1xf32>
    %23 = arith.subf %21, %22 : vector<32x1xf32>
    %cst_11 = arith.constant 0.000000e+00 : f32
    %24 = vector.broadcast %cst_11 : f32 to vector<32x1xf32>
    %25 = arith.maximumf %23, %24 : vector<32x1xf32>
    %cst_12 = arith.constant 9.99999974E-6 : f32
    %26 = vector.broadcast %cst_12 : f32 to vector<32x1xf32>
    %27 = arith.addf %25, %26 : vector<32x1xf32>
    %28 = math.rsqrt %27 : vector<32x1xf32>
    %cst_13 = arith.constant 0.000000e+00 : f32
    %29 = vector.broadcast %cst_13 : f32 to vector<32x1xf32>
    %30 = arith.subf %29, %19 : vector<32x1xf32>
    %31 = arith.mulf %30, %28 : vector<32x1xf32>
    %32 = vector.broadcast %28 : vector<32x1xf32> to vector<32x8xf32>
    %33 = arith.mulf %2, %32 : vector<32x8xf32>
    %34 = vector.broadcast %31 : vector<32x1xf32> to vector<32x8xf32>
    %35 = arith.addf %33, %34 : vector<32x8xf32>
    %36 = vector.broadcast %28 : vector<32x1xf32> to vector<32x8xf32>
    %37 = arith.mulf %5, %36 : vector<32x8xf32>
    %38 = vector.broadcast %31 : vector<32x1xf32> to vector<32x8xf32>
    %39 = arith.addf %37, %38 : vector<32x8xf32>
    %c0_14 = arith.constant 0 : index
    %c0_15 = arith.constant 0 : index
    %40 = vector.load %arg2[%c0_14, %c0_15] : memref<8x8xf32, #tpu.memory_space<vmem>>, vector<8x8xf32>
    %cst_16 = arith.constant dense<0.000000e+00> : vector<32x8xf32>
    %41 = tpu.matmul %35, %40, %cst_16 {dimension_numbers = #tpu.dot_dimension_numbers<[1], [0], [0], [1], [0, 0, 1, 1], [], []>, precision = #tpu.contract_precision<fp32>} : vector<32x8xf32>, vector<8x8xf32>, vector<32x8xf32> -> vector<32x8xf32>
    %c0_17 = arith.constant 0 : index
    %c0_18 = arith.constant 0 : index
    %42 = vector.load %arg3[%c0_17, %c0_18] : memref<8x8xf32, #tpu.memory_space<vmem>>, vector<8x8xf32>
    %cst_19 = arith.constant dense<0.000000e+00> : vector<32x8xf32>
    %43 = tpu.matmul %39, %42, %cst_19 {dimension_numbers = #tpu.dot_dimension_numbers<[1], [0], [0], [1], [0, 0, 1, 1], [], []>, precision = #tpu.contract_precision<fp32>} : vector<32x8xf32>, vector<8x8xf32>, vector<32x8xf32> -> vector<32x8xf32>
    %44 = arith.addf %41, %43 : vector<32x8xf32>
    %c0_20 = arith.constant 0 : index
    %c0_21 = arith.constant 0 : index
    %45 = vector.load %arg4[%c0_20, %c0_21] : memref<1x8xf32, #tpu.memory_space<vmem>>, vector<1x8xf32>
    %46 = vector.broadcast %45 : vector<1x8xf32> to vector<32x8xf32>
    %47 = arith.addf %44, %46 : vector<32x8xf32>
    %48 = vector.shape_cast %47 : vector<32x8xf32> to vector<4x8x8xf32>
    %c0_22 = arith.constant 0 : index
    %c0_23 = arith.constant 0 : index
    %c0_24 = arith.constant 0 : index
    %49 = vector.load %arg5[%c0_22, %c0_23, %c0_24] : memref<4x8x8xf32, #tpu.memory_space<vmem>>, vector<4x8x8xf32>
    tpu.vector_store %arg5[%c0_22, %c0_23, %c0_24], %48 {strides = array<i32>} : memref<4x8x8xf32, #tpu.memory_space<vmem>>, vector<4x8x8xf32>,
    return
  }
  func.func @transform_0(%arg0: i32) -> (i32, i32, i32, i32) {
    %c0_i32 = arith.constant 0 : i32
    %c0_i32_0 = arith.constant 0 : i32
    %c0_i32_1 = arith.constant 0 : i32
    %c0_i32_2 = arith.constant 0 : i32
    return %arg0, %c0_i32, %c0_i32_0, %c0_i32_1 : i32, i32, i32, i32
  }
  func.func @transform_1(%arg0: i32) -> (i32, i32) {
    %c0_i32 = arith.constant 0 : i32
    %c0_i32_0 = arith.constant 0 : i32
    %c0_i32_1 = arith.constant 0 : i32
    return %c0_i32, %c0_i32_0 : i32, i32
  }
  func.func @transform_2(%arg0: i32) -> (i32, i32) {
    %c0_i32 = arith.constant 0 : i32
    %c0_i32_0 = arith.constant 0 : i32
    %c0_i32_1 = arith.constant 0 : i32
    return %c0_i32, %c0_i32_0 : i32, i32
  }
  func.func @transform_3(%arg0: i32) -> (i32, i32) {
    %c0_i32 = arith.constant 0 : i32
    %c0_i32_0 = arith.constant 0 : i32
    %c0_i32_1 = arith.constant 0 : i32
    return %c0_i32, %c0_i32_0 : i32, i32
  }
  func.func @transform_4(%arg0: i32) -> (i32, i32, i32) {
    %c0_i32 = arith.constant 0 : i32
    %c0_i32_0 = arith.constant 0 : i32
    %c0_i32_1 = arith.constant 0 : i32
    return %arg0, %c0_i32, %c0_i32_0 : i32, i32, i32
  }
}

</mosaic_0001>

<bundles_post_ra>
// kernel: tpu_custom_call.1
= control target key start
LH: loop header
LB: loop body
LE: loop exit
PB: predicated region body
PF: predicated region fallthrough
CT: control target
= control target key end

     0   :  { %s1005_s15 = smov 0   ;;  %s1178_s0 = inlined_call_operand.vmem [shape: f32[16,2,8,8], index: 0, kind: input, shape index: {}]   ;;  %s1179_s1 = inlined_call_operand.vmem [shape: f32[8,8], index: 1, kind: input, shape index: {}]   ;;  %s1180_s2 = inlined_call_operand.vmem [shape: f32[8,8], index: 2, kind: input, shape index: {}]   ;;  %s1181_s3 = inlined_call_operand.vmem [shape: f32[1,8], index: 3, kind: input, shape index: {}]   ;;  %s1182_s4 = inlined_call_operand.vmem [shape: f32[16,8,8], index: 4, kind: output, shape index: {}]  }
   0x1 LB: > { %s938_s16 = sadd.s32 4294967295, %s978_s15   ;;  %p942_p0 = scmp.ge.s32.totalorder %s978_s15, 1  ;;  %s978_s15 = sphi %s1005_s15, %s14_s15  }
   0x2   : > { %p164_p1 = scmp.lt.s32.totalorder %s978_s15, 5 }
   0x4   : > { %p165_p2 = pnand %p942_p0, %p164_p1 }
   0x5   : > { %s943_s17 = sshll.u32 (!%p165_p2), %s938_s16, 2 }
   0x6   : > { %168 = sbr.rel (%p165_p2) target bundleno = 416 (0x1a0), region = 36  ;;  %p192_p3 = scmp.lt.s32.totalorder (!%p165_p2), %s943_s17, 15 }
   0xb   : > { %s1184_s17 = smov (!%p192_p3, %s943_s17), 15  ;;  %vm213_vm0 = vcmask 64512   ;;  %v367_v35 = vld [vmem:[%s1180_s2] sm:$0xff] }
   0xc   : > { %s954_s18 = sshll.u32 %s1184_s17, 4  ;;  %v395_v36 = vand.u32 4294901760, %v367_v35  ;;  %s947_s26 = sshll.u32 %s1184_s17, 3 }
   0xd   : > { %s1019_s21 = scalar_lea.vmem %s1178_s0, %s954_s18  ;;  %s1165_s5 = scalar_lea.vmem %s1182_s4, %s947_s26 }
   0xe   : > { %v1022_v0 = vld [vmem:[%s1019_s21 + $0x10] sm:$0xff]  ;;  %v1025_v1 = vld [vmem:[%s1019_s21] sm:$0xff]  ;;  %v1034_v5 = vld [vmem:[%s1019_s21 + $0x8] sm:$0xff]  ;;  %v446_v37 = vsub.f32 %v367_v35, %v395_v36  ;;  %523 = vmatpush.msra.mxu3 %v395_v36  ;;  %396 = vmatpush.msra.mxu0 %v395_v36 }
   0xf   : > { %v217_v2 = vsel %vm213_vm0, %v1022_v0, 0.0  ;;  %v214_v3 = vsel %vm213_vm0, %v1025_v1, 0.0  ;;  %v242_v4 = vmul.f32 %v1025_v1, %v1025_v1  ;;  %v1038_v7 = vld [vmem:[%s1019_s21 + $0x18] sm:$0xff]  ;;  %v258_v8 = vmul.f32 %v1034_v5, %v1034_v5  ;;  %v1050_v13 = vld [vmem:[%s1019_s21 + $0x20] sm:$0xff]  ;;  %v1058_v17 = vld [vmem:[%s1019_s21 + $0x28] sm:$0xff] }
  0x10   : > { %218 = vadd.xlane.f32.xlu2 %v217_v2  ;;  %215 = vadd.xlane.f32.xlu0 %v214_v3  ;;  %v229_v9 = vsel %vm213_vm0, %v1038_v7, 0.0  ;;  %v226_v10 = vsel %vm213_vm0, %v1034_v5, 0.0  ;;  %v243_v12 = vmul.f32 %v1022_v0, %v1022_v0  ;;  %v259_v14 = vmul.f32 %v1038_v7, %v1038_v7  ;;  %v1070_v24 = vld [vmem:[%s1019_s21 + $0x30] sm:$0xff]  ;;  %v1075_v26 = vld [vmem:[%s1019_s21 + $0x38] sm:$0xff] }
  0x11   : > { %v246_v6 = vsel %vm213_vm0, %v242_v4, 0.0  ;;  %v262_v11 = vsel %vm213_vm0, %v258_v8, 0.0  ;;  %v220_v16 = vsel %vm213_vm0, %v1050_v13, 0.0  ;;  %v260_v19 = vmul.f32 %v1058_v17, %v1058_v17  ;;  %485 = vmatpush.msra.mxu2 %v446_v37 }
  0x12   : > { %247 = vadd.xlane.f32.xlu1 %v246_v6  ;;  %v249_v15 = vsel %vm213_vm0, %v243_v12, 0.0  ;;  %v265_v18 = vsel %vm213_vm0, %v259_v14, 0.0  ;;  %v244_v20 = vmul.f32 %v1050_v13, %v1050_v13  ;;  %v232_v21 = vsel %vm213_vm0, %v1058_v17, 0.0 }
  0x13   : > { %v268_v22 = vsel %vm213_vm0, %v260_v19, 0.0  ;;  %v245_v25 = vmul.f32 %v1070_v24, %v1070_v24  ;;  %v223_v27 = vsel %vm213_vm0, %v1070_v24, 0.0  ;;  %v235_v29 = vsel %vm213_vm0, %v1075_v26, 0.0 }
  0x14   : > { %v252_v23 = vsel %vm213_vm0, %v244_v20, 0.0  ;;  %v261_v30 = vmul.f32 %v1075_v26, %v1075_v26  ;;  %v447_v40 = vand.u32 4294901760, %v446_v37 }
  0x15   : > { %v255_v28 = vsel %vm213_vm0, %v245_v25, 0.0 }
  0x16   : > { %v271_v31 = vsel %vm213_vm0, %v261_v30, 0.0  ;;  %v448_v43 = vsub.f32 %v446_v37, %v447_v40  ;;  %567 = vmatpush.msrb.mxu0 %v447_v40 }
  0x18   : > { %230 = vadd.xlane.f32.xlu2 %v229_v9  ;;  %227 = vadd.xlane.f32.xlu0 %v226_v10  ;;  %v449_v46 = vand.u32 4294901760, %v448_v43 }
  0x1a   : > { %263 = vadd.xlane.f32.xlu1 %v262_v11  ;;  %450 = vmatpush.msra.mxu1 %v449_v46 }
  0x1c   : > { %601 = vmatpush.msrb.mxu1 %v395_v36 }
  0x20   : > { %250 = vadd.xlane.f32.xlu0 %v249_v15  ;;  %221 = vadd.xlane.f32.xlu2 %v220_v16 }
  0x22   : > { %266 = vadd.xlane.f32.xlu1 %v265_v18 }
  0x28   : > { %233 = vadd.xlane.f32.xlu0 %v232_v21  ;;  %269 = vadd.xlane.f32.xlu2 %v268_v22 }
  0x2a   : > { %253 = vadd.xlane.f32.xlu1 %v252_v23 }
  0x30   : > { %224 = vadd.xlane.f32.xlu0 %v223_v27  ;;  %256 = vadd.xlane.f32.xlu2 %v255_v28  ;;  %v366_v28 = vld [vmem:[%s1179_s1] sm:$0xff] }
  0x31   : > { %v646_v30 = vand.u32 4294901760, %v366_v28 }
  0x32   : > { %236 = vadd.xlane.f32.xlu1 %v235_v29 }
  0x33   : > { %647 = vmatpush.msrb.mxu2 %v646_v30  ;;  %v697_v36 = vsub.f32 %v366_v28, %v646_v30 }
  0x38   : > { %272 = vadd.xlane.f32.xlu0 %v271_v31 }
  0x83   : > { %v219_v32 = vpop.xlane.xlu2 %218  ;;  %v216_v33 = vpop.xlane.xlu0 %215 }
  0x85   : > { %v248_v34 = vpop.xlane.xlu1 %247 }
  0x8b   : > { %v231_v38 = vpop.xlane.xlu2 %230  ;;  %v228_v39 = vpop.xlane.xlu0 %227 }
  0x8c   : > { %v238_v41 = vadd.f32 %v228_v39, %v216_v33  ;;  %v239_v47 = vadd.f32 %v231_v38, %v219_v32 }
  0x8d   : > { %v264_v42 = vpop.xlane.xlu1 %263 }
  0x8e   : > { %v278_v44 = vmul.f32 0.0625, %v238_v41  ;;  %v274_v45 = vadd.f32 %v264_v42, %v248_v34  ;;  %v1088_v53 = vmul.f32 0.0625, %v239_v47  ;;  %v698_v42 = vand.u32 4294901760, %v697_v36 }
  0x90   : > { %v286_v48 = vmul.f32 %v278_v44, %v278_v44  ;;  %v282_v49 = vmul.f32 0.0625, %v274_v45  ;;  %v287_v58 = vmul.f32 %v1088_v53, %v1088_v53  ;;  %v342_v31 = vsub.f32 0.0, %v278_v44 }
  0x91   : > { %v699_v47 = vsub.f32 %v697_v36, %v698_v42 }
  0x92   : > { %v290_v50 = vsub.f32 %v282_v49, %v286_v48 }
  0x93   : > { %v251_v51 = vpop.xlane.xlu0 %250  ;;  %v222_v52 = vpop.xlane.xlu2 %221 }
  0x94   : > { %v294_v54 = vmax.f32 %v290_v50, 0.0 }
  0x95   : > { %v267_v55 = vpop.xlane.xlu1 %266 }
  0x96   : > { %v275_v56 = vadd.f32 %v267_v55, %v251_v51  ;;  %v298_v57 = vadd.f32 1e-05, %v294_v54  ;;  %v343_v51 = vsub.f32 0.0, %v1088_v53 }
  0x98   : > { %v283_v59 = vmul.f32 0.0625, %v275_v56  ;;  %964 = vrsqrt.f32 %v298_v57  ;;  %vm308_vm2 = vweird.f32 %v298_v57  ;;  %v700_v56 = vand.u32 4294901760, %v699_v47 }
  0x9a   : > { %v291_v60 = vsub.f32 %v283_v59, %v287_v58  ;;  %701 = vmatpush.msrb.mxu3 %v700_v56 }
  0x9b   : > { %v234_v61 = vpop.xlane.xlu0 %233  ;;  %v270_v62 = vpop.xlane.xlu2 %269 }
  0x9c   : > { %v295_v63 = vmax.f32 %v291_v60, 0.0  ;;  %v240_v2 = vadd.f32 %v234_v61, %v222_v52 }
  0x9d   : > { %v254_v3 = vpop.xlane.xlu1 %253 }
  0x9e   : > { %v299_v4 = vadd.f32 1e-05, %v295_v63  ;;  %v1092_v6 = vmul.f32 0.0625, %v240_v2  ;;  %v276_v8 = vadd.f32 %v270_v62, %v254_v3  ;;  %v965_v9 = vpop.eup %964 }
  0x9f   : > { %v303_v10 = vmul.f32 %v965_v9, %v298_v57  ;;  %vm309_vm1 = vweird.f32 %v965_v9 }
  0xa0   : > { %966 = vrsqrt.f32 %v299_v4  ;;  %v288_v11 = vmul.f32 %v1092_v6, %v1092_v6  ;;  %v284_v12 = vmul.f32 0.0625, %v276_v8  ;;  %vm310_vm3 = vmor %vm308_vm2, %vm309_vm1  ;;  %vm318_vm5 = vweird.f32 %v299_v4 }
  0xa1   : > { %v304_v14 = vmul.f32 %v965_v9, %v303_v10 }
  0xa2   : > { %v292_v15 = vsub.f32 %v284_v12, %v288_v11  ;;  %v344_v11 = vsub.f32 0.0, %v1092_v6 }
  0xa3   : > { %v225_v16 = vpop.xlane.xlu0 %224  ;;  %v305_v18 = vmul.f32 0.5, %v304_v14  ;;  %v257_v33 = vpop.xlane.xlu2 %256 }
  0xa4   : > { %v296_v19 = vmax.f32 %v292_v15, 0.0 }
  0xa5   : > { %v237_v20 = vpop.xlane.xlu1 %236  ;;  %v306_v22 = vsub.f32 1.5, %v305_v18 }
  0xa6   : > { %v967_v21 = vpop.eup %966  ;;  %v241_v23 = vadd.f32 %v237_v20, %v225_v16  ;;  %v1096_v27 = vadd.f32 1e-05, %v296_v19 }
  0xa7   : > { %v313_v25 = vmul.f32 %v967_v21, %v299_v4  ;;  %v307_v29 = vmul.f32 %v965_v9, %v306_v22  ;;  %vm319_vm4 = vweird.f32 %v967_v21 }
  0xa8   : > { %968 = vrsqrt.f32 %v1096_v27  ;;  %v1104_v35 = vmul.f32 0.0625, %v241_v23  ;;  %vm320_vm6 = vmor %vm318_vm5, %vm319_vm4  ;;  %vm328_vm8 = vweird.f32 %v1096_v27 }
  0xa9   : > { %v314_v32 = vmul.f32 %v967_v21, %v313_v25  ;;  %v1102_v34 = vsel %vm310_vm3, %v965_v9, %v307_v29 }
  0xaa   : > { %v1107_v39 = vmul.f32 %v342_v31, %v1102_v34  ;;  %v358_v40 = vmul.f32 %v1034_v5, %v1102_v34  ;;  %v289_v45 = vmul.f32 %v1104_v35, %v1104_v35  ;;  %v350_v20 = vmul.f32 %v1102_v34, %v1025_v1 }
  0xab   : > { %v315_v37 = vmul.f32 0.5, %v314_v32  ;;  %v273_v38 = vpop.xlane.xlu0 %272 }
  0xac   : > { %v277_v41 = vadd.f32 %v273_v38, %v257_v33  ;;  %v362_v44 = vadd.f32 %v358_v40, %v1107_v39  ;;  %v354_v29 = vadd.f32 %v350_v20, %v1107_v39 }
  0xad   : > { %v316_v43 = vsub.f32 1.5, %v315_v37 }
  0xae   : > { %v285_v46 = vmul.f32 0.0625, %v277_v41  ;;  %v969_v48 = vpop.eup %968  ;;  %v369_v50 = vsel %vm213_vm0, %v362_v44, 0  ;;  %v620_v32 = vsel %vm213_vm0, %v354_v29, 0 }
  0xaf   : > { %v317_v49 = vmul.f32 %v967_v21, %v316_v43  ;;  %v323_v5 = vmul.f32 %v969_v48, %v1096_v27  ;;  %v1117_v54 = vand.u32 4294901760, %v369_v50  ;;  %vm329_vm7 = vweird.f32 %v969_v48 }
  0xb0   : > { %v293_v52 = vsub.f32 %v285_v46, %v289_v45  ;;  %vm330_vm9 = vmor %vm328_vm8, %vm329_vm7  ;;  %v648_v39 = vand.u32 4294901760, %v620_v32 }
  0xb1   : > { %v321_v55 = vsel %vm320_vm6, %v967_v21, %v317_v49  ;;  %v324_v57 = vmul.f32 %v969_v48, %v323_v5  ;;  %452 = vmatmul.f32.vlgmr.msra.gmra.mxu1 %v1117_v54  ;;  %v398_v59 = vsub.f32 %v369_v50, %v1117_v54 }
  0xb2   : > { %v297_v58 = vmax.f32 %v293_v52, 0.0  ;;  %v1121_v60 = vmul.f32 %v343_v51, %v321_v55  ;;  %v359_v61 = vmul.f32 %v1038_v7, %v321_v55  ;;  %774 = vmatpush.msra.mxu1 %v646_v30  ;;  %v351_v33 = vmul.f32 %v321_v55, %v1022_v0 }
  0xb3   : > { %v325_v53 = vmul.f32 0.5, %v324_v57  ;;  %488 = vmatmul.f32.vlgmr.msra.gmra.mxu2 %v398_v59  ;;  %v399_v63 = vand.u32 4294901760, %v398_v59  ;;  %v649_v45 = vsub.f32 %v620_v32, %v648_v39 }
  0xb4   : > { %v301_v62 = vadd.f32 1e-05, %v297_v58  ;;  %v363_v2 = vadd.f32 %v359_v61, %v1121_v60  ;;  %818 = vmatpush.msra.mxu2 %v698_v42  ;;  %v355_v43 = vadd.f32 %v351_v33, %v1121_v60 }
  0xb5   : > { %v326_v3 = vsub.f32 1.5, %v325_v53  ;;  %527 = vmatmul.f32.vlgmr.msra.gmra.mxu3 %v399_v63  ;;  %v400_v4 = vsub.f32 %v398_v59, %v399_v63  ;;  %v650_v49 = vand.u32 4294901760, %v649_v45 }
  0xb6   : > { %970 = vrsqrt.f32 %v301_v62  ;;  %v372_v8 = vsel %vm213_vm0, %v363_v2, 0  ;;  %852 = vmatpush.msra.mxu3 %v646_v30  ;;  %vm338_vm11 = vweird.f32 %v301_v62  ;;  %v623_v46 = vsel %vm213_vm0, %v355_v43, 0 }
  0xb7   : > { %v327_v9 = vmul.f32 %v969_v48, %v326_v3  ;;  %v401_v7 = vand.u32 4294901760, %v400_v4  ;;  %v1127_v10 = vand.u32 4294901760, %v372_v8  ;;  %v656_v50 = vand.u32 4294901760, %v623_v46 }
  0xb8   : > { %v651_v52 = vsub.f32 %v649_v45, %v650_v49 }
  0xb9   : > { %v331_v12 = vsel %vm330_vm9, %v969_v48, %v327_v9  ;;  %402 = vmatmul.f32.vlgmr.msra.gmra.mxu0 %v401_v7  ;;  %456 = vmatmul.f32.gmra.mxu1 %v1127_v10  ;;  %v406_v14 = vsub.f32 %v372_v8, %v1127_v10  ;;  %v657_v55 = vsub.f32 %v623_v46, %v656_v50 }
  0xba   : > { %v348_v15 = vmul.f32 %v344_v11, %v331_v12  ;;  %v360_v16 = vmul.f32 %v1058_v17, %v331_v12  ;;  %736 = vmatpush.msra.mxu0 %v697_v36  ;;  %v345_v36 = vsub.f32 0.0, %v1104_v35  ;;  %v352_v35 = vmul.f32 %v331_v12, %v1050_v13 }
  0xbb   : > { %493 = vmatmul.f32.gmra.mxu2 %v406_v14  ;;  %v407_v19 = vand.u32 4294901760, %v406_v14  ;;  %v652_v13 = vand.u32 4294901760, %v651_v52  ;;  %v658_v59 = vand.u32 4294901760, %v657_v55 }
  0xbc   : > { %v971_v18 = vpop.eup %970  ;;  %v364_v22 = vadd.f32 %v360_v16, %v348_v15  ;;  %v356_v51 = vadd.f32 %v352_v35, %v348_v15 }
  0xbd   : > { %v333_v21 = vmul.f32 %v971_v18, %v301_v62  ;;  %533 = vmatmul.f32.gmra.mxu3 %v407_v19  ;;  %v408_v6 = vsub.f32 %v406_v14, %v407_v19  ;;  %vm339_vm10 = vweird.f32 %v971_v18  ;;  %v659_v53 = vsub.f32 %v657_v55, %v658_v59 }
  0xbe   : > { %v375_v25 = vsel %vm213_vm0, %v364_v22, 0  ;;  %vm340_vm12 = vmor %vm338_vm11, %vm339_vm10  ;;  %v626_v56 = vsel %vm213_vm0, %v356_v51, 0 }
  0xbf   : > { %v334_v23 = vmul.f32 %v971_v18, %v333_v21  ;;  %v409_v27 = vand.u32 4294901760, %v408_v6  ;;  %v1136_v28 = vand.u32 4294901760, %v375_v25  ;;  %v664_v60 = vand.u32 4294901760, %v626_v56 }
  0xc0   : > { %v660_v2 = vand.u32 4294901760, %v659_v53 }
  0xc1   : > { %v335_v17 = vmul.f32 0.5, %v334_v23  ;;  %410 = vmatmul.f32.gmra.mxu0 %v409_v27  ;;  %460 = vmatmul.f32.gmra.mxu1 %v1136_v28  ;;  %v414_v30 = vsub.f32 %v375_v25, %v1136_v28  ;;  %v665_v62 = vsub.f32 %v626_v56, %v664_v60 }
  0xc3   : > { %v336_v31 = vsub.f32 1.5, %v335_v17  ;;  %498 = vmatmul.f32.gmra.mxu2 %v414_v30  ;;  %v415_v1 = vand.u32 4294901760, %v414_v30 }
  0xc5   : > { %v337_v34 = vmul.f32 %v971_v18, %v336_v31  ;;  %539 = vmatmul.f32.gmra.mxu3 %v415_v1  ;;  %v416_v37 = vsub.f32 %v414_v30, %v415_v1 }
  0xc7   : > { %v341_v38 = vsel %vm340_vm12, %v971_v18, %v337_v34  ;;  %v417_v40 = vand.u32 4294901760, %v416_v37 }
  0xc8   : > { %v349_v41 = vmul.f32 %v345_v36, %v341_v38  ;;  %v361_v42 = vmul.f32 %v1075_v26, %v341_v38  ;;  %v353_v57 = vmul.f32 %v341_v38, %v1070_v24  ;;  %v666_v24 = vand.u32 4294901760, %v665_v62 }
  0xc9   : > { %418 = vmatmul.f32.gmra.mxu0 %v417_v40 }
  0xca   : > { %v365_v44 = vadd.f32 %v361_v42, %v349_v41  ;;  %v357_v61 = vadd.f32 %v353_v57, %v349_v41  ;;  %v667_v4 = vsub.f32 %v665_v62, %v666_v24 }
  0xcc   : > { %v378_v0 = vsel %vm213_vm0, %v365_v44, 0  ;;  %v629_v63 = vsel %vm213_vm0, %v357_v61, 0  ;;  %v668_v9 = vand.u32 4294901760, %v667_v4  ;;  %v963_v4 = vld [vmem:[%s1181_s3] ss:$0 sm:$0xff] }
  0xcd   : > { %v421_v47 = vand.u32 4294901760, %v378_v0  ;;  %v672_v3 = vand.u32 4294901760, %v629_v63 }
  0xcf   : > { %464 = vmatmul.f32.gmra.mxu1 %v421_v47  ;;  %v422_v48 = vsub.f32 %v378_v0, %v421_v47  ;;  %v673_v8 = vsub.f32 %v629_v63, %v672_v3 }
  0xd1   : > { %503 = vmatmul.f32.gmra.mxu2 %v422_v48  ;;  %v423_v5 = vand.u32 4294901760, %v422_v48  ;;  %v674_v7 = vand.u32 4294901760, %v673_v8 }
  0xd3   : > { %545 = vmatmul.f32.gmra.mxu3 %v423_v5  ;;  %v424_v26 = vsub.f32 %v422_v48, %v423_v5  ;;  %v675_v11 = vsub.f32 %v673_v8, %v674_v7 }
  0xd5   : > { %v425_v58 = vand.u32 4294901760, %v424_v26 }
  0xd7   : > { %426 = vmatmul.f32.gmra.mxu0 %v425_v58  ;;  %603 = vmatmul.f32.vlgmr.msrb.gmra.mxu1 %v1117_v54 }
  0xd9   : > { %653 = vmatmul.f32.vlgmr.msrb.gmra.mxu2 %v652_v13 }
  0xdb   : > { %703 = vmatmul.f32.vlgmr.msrb.gmra.mxu3 %v648_v39 }
  0xdf   : > { %569 = vmatmul.f32.vlgmr.msrb.gmra.mxu0 %v1117_v54  ;;  %607 = vmatmul.f32.gmra.mxu1 %v1127_v10  ;;  %v676_v54 = vand.u32 4294901760, %v675_v11 }
  0xe1   : > { %661 = vmatmul.f32.gmra.mxu2 %v660_v2 }
  0xe3   : > { %707 = vmatmul.f32.gmra.mxu3 %v656_v50 }
  0xe7   : > { %573 = vmatmul.f32.gmra.mxu0 %v1127_v10  ;;  %611 = vmatmul.f32.gmra.mxu1 %v1136_v28 }
  0xe9   : > { %669 = vmatmul.f32.gmra.mxu2 %v668_v9 }
  0xeb   : > { %711 = vmatmul.f32.gmra.mxu3 %v664_v60 }
  0xef   : > { %577 = vmatmul.f32.gmra.mxu0 %v1136_v28  ;;  %615 = vmatmul.f32.gmra.mxu1 %v421_v47 }
  0xf1   : > { %677 = vmatmul.f32.gmra.mxu2 %v676_v54 }
  0xf3   : > { %715 = vmatmul.f32.gmra.mxu3 %v672_v3 }
  0xf7   : > { %581 = vmatmul.f32.gmra.mxu0 %v421_v47  ;;  %778 = vmatmul.f32.vlgmr.msra.gmra.mxu1 %v650_v49 }
  0xf9   : > { %820 = vmatmul.f32.vlgmr.msra.gmra.mxu2 %v648_v39 }
  0xfb   : > { %854 = vmatmul.f32.vlgmr.msra.gmra.mxu3 %v648_v39 }
  0xff   : > { %739 = vmatmul.f32.vlgmr.msra.gmra.mxu0 %v649_v45  ;;  %784 = vmatmul.f32.gmra.mxu1 %v658_v59 }
 0x101   : > { %824 = vmatmul.f32.gmra.mxu2 %v656_v50 }
 0x103   : > { %858 = vmatmul.f32.gmra.mxu3 %v656_v50 }
 0x107   : > { %744 = vmatmul.f32.gmra.mxu0 %v657_v55  ;;  %790 = vmatmul.f32.gmra.mxu1 %v666_v24 }
 0x109   : > { %828 = vmatmul.f32.gmra.mxu2 %v664_v60 }
 0x10b   : > { %862 = vmatmul.f32.gmra.mxu3 %v664_v60 }
 0x10f   : > { %749 = vmatmul.f32.gmra.mxu0 %v665_v62  ;;  %796 = vmatmul.f32.gmra.mxu1 %v674_v7 }
 0x111   : > { %832 = vmatmul.f32.gmra.mxu2 %v672_v3 }
 0x113   : > { %866 = vmatmul.f32.gmra.mxu3 %v672_v3 }
 0x117   : > { %754 = vmatmul.f32.gmra.mxu0 %v673_v8 }
 0x12e   : > { %v453_v10 = vpop.f32.mrf.mxu1 }
 0x136   : > { %v403_v12 = vpop.f32.mrf.mxu0  ;;  %v489_v14 = vpop.f32.mrf.mxu2 }
 0x137   : > { %v457_v15 = vpop.f32.mrf.mxu1  ;;  %v454_v36 = vadd.f32 %v453_v10, %v403_v12 }
 0x138   : > { %v528_v16 = vpop.f32.mrf.mxu3 }
 0x139   : > { %v490_v39 = vadd.f32 %v489_v14, %v454_v36 }
 0x13b   : > { %v529_v42 = vadd.f32 %v528_v16, %v490_v39 }
 0x13e   : > { %v411_v18 = vpop.f32.mrf.mxu0  ;;  %v494_v19 = vpop.f32.mrf.mxu2 }
 0x13f   : > { %v461_v20 = vpop.f32.mrf.mxu1  ;;  %v458_v43 = vadd.f32 %v457_v15, %v411_v18 }
 0x140   : > { %v534_v21 = vpop.f32.mrf.mxu3 }
 0x141   : > { %v495_v46 = vadd.f32 %v494_v19, %v458_v43 }
 0x143   : > { %v535_v49 = vadd.f32 %v534_v21, %v495_v46 }
 0x146   : > { %v419_v22 = vpop.f32.mrf.mxu0  ;;  %v499_v6 = vpop.f32.mrf.mxu2 }
 0x147   : > { %v462_v50 = vadd.f32 %v461_v20, %v419_v22 }
 0x148   : > { %v540_v25 = vpop.f32.mrf.mxu3 }
 0x149   : > { %v500_v55 = vadd.f32 %v499_v6, %v462_v50 }
 0x14b   : > { %v541_v59 = vadd.f32 %v540_v25, %v500_v55 }
 0x14c   : > { %v465_v23 = vpop.f32.mrf.mxu1 }
 0x154   : > { %v427_v27 = vpop.f32.mrf.mxu0  ;;  %v504_v28 = vpop.f32.mrf.mxu2 }
 0x155   : > { %v604_v29 = vpop.f32.mrf.mxu1  ;;  %v466_v60 = vadd.f32 %v465_v23, %v427_v27 }
 0x156   : > { %v546_v17 = vpop.f32.mrf.mxu3 }
 0x157   : > { %v505_v24 = vadd.f32 %v504_v28, %v466_v60 }
 0x159   : > { %v547_v12 = vadd.f32 %v546_v17, %v505_v24 }
 0x15c   : > { %v570_v30 = vpop.f32.mrf.mxu0  ;;  %v654_v31 = vpop.f32.mrf.mxu2 }
 0x15d   : > { %v608_v1 = vpop.f32.mrf.mxu1  ;;  %v571_v0 = vadd.f32 %v570_v30, %v529_v42 }
 0x15e   : > { %v704_v32 = vpop.f32.mrf.mxu3 }
 0x15f   : > { %v605_v35 = vadd.f32 %v604_v29, %v571_v0 }
 0x161   : > { %v655_v5 = vadd.f32 %v654_v31, %v605_v35 }
 0x163   : > { %v705_v56 = vadd.f32 %v704_v32, %v655_v5 }
 0x164   : > { %v574_v33 = vpop.f32.mrf.mxu0  ;;  %v662_v34 = vpop.f32.mrf.mxu2 }
 0x165   : > { %v612_v37 = vpop.f32.mrf.mxu1  ;;  %v575_v26 = vadd.f32 %v574_v33, %v535_v49 }
 0x166   : > { %v708_v38 = vpop.f32.mrf.mxu3 }
 0x167   : > { %v609_v57 = vadd.f32 %v608_v1, %v575_v26 }
 0x169   : > { %v663_v62 = vadd.f32 %v662_v34, %v609_v57 }
 0x16b   : > { %v709_v9 = vadd.f32 %v708_v38, %v663_v62 }
 0x16c   : > { %v578_v40 = vpop.f32.mrf.mxu0  ;;  %v670_v41 = vpop.f32.mrf.mxu2 }
 0x16d   : > { %v616_v44 = vpop.f32.mrf.mxu1  ;;  %v579_v63 = vadd.f32 %v578_v40, %v541_v59 }
 0x16e   : > { %v712_v45 = vpop.f32.mrf.mxu3 }
 0x16f   : > { %v613_v7 = vadd.f32 %v612_v37, %v579_v63 }
 0x171   : > { %v671_v18 = vadd.f32 %v670_v41, %v613_v7 }
 0x173   : > { %v713_v22 = vadd.f32 %v712_v45, %v671_v18 }
 0x174   : > { %v582_v47 = vpop.f32.mrf.mxu0  ;;  %v678_v48 = vpop.f32.mrf.mxu2 }
 0x175   : > { %v779_v52 = vpop.f32.mrf.mxu1  ;;  %v583_v19 = vadd.f32 %v582_v47, %v547_v12 }
 0x176   : > { %v716_v51 = vpop.f32.mrf.mxu3 }
 0x177   : > { %v617_v6 = vadd.f32 %v616_v44, %v583_v19 }
 0x179   : > { %v679_v17 = vadd.f32 %v678_v48, %v617_v6 }
 0x17b   : > { %v717_v33 = vadd.f32 %v716_v51, %v679_v17 }
 0x17c   : > { %v740_v58 = vpop.f32.mrf.mxu0  ;;  %v821_v13 = vpop.f32.mrf.mxu2 }
 0x17d   : > { %v741_v61 = vadd.f32 %v740_v58, %v705_v56  ;;  %v785_v8 = vpop.f32.mrf.mxu1 }
 0x17e   : > { %v855_v53 = vpop.f32.mrf.mxu3 }
 0x17f   : > { %v780_v2 = vadd.f32 %v779_v52, %v741_v61 }
 0x181   : > { %v822_v3 = vadd.f32 %v821_v13, %v780_v2 }
 0x183   : > { %v856_v11 = vadd.f32 %v855_v53, %v822_v3 }
 0x184   : > { %v745_v54 = vpop.f32.mrf.mxu0  ;;  %v825_v10 = vpop.f32.mrf.mxu2 }
 0x185   : > { %v874_v14 = vadd.f32 %v963_v4, %v856_v11  ;;  %v746_v15 = vadd.f32 %v745_v54, %v709_v9  ;;  %v791_v25 = vpop.f32.mrf.mxu1 }
 0x186   : > { %v859_v16 = vpop.f32.mrf.mxu3 }
 0x187   : > { %878 = vst.msk [vmem:[%s1165_s5] sm:$0xff] %vm213_vm0, %v874_v14  ;;  %v786_v20 = vadd.f32 %v785_v8, %v746_v15 }
 0x189   : > { %v826_v21 = vadd.f32 %v825_v10, %v786_v20 }
 0x18b   : > { %v860_v23 = vadd.f32 %v859_v16, %v826_v21 }
 0x18c   : > { %v750_v27 = vpop.f32.mrf.mxu0  ;;  %v829_v30 = vpop.f32.mrf.mxu2 }
 0x18d   : > { %v875_v28 = vadd.f32 %v963_v4, %v860_v23  ;;  %v751_v29 = vadd.f32 %v750_v27, %v713_v22  ;;  %v797_v39 = vpop.f32.mrf.mxu1 }
 0x18e   : > { %v863_v1 = vpop.f32.mrf.mxu3 }
 0x18f   : > { %879 = vst.msk [vmem:[%s1165_s5 + $0x8] sm:$0xff] %vm213_vm0, %v875_v28  ;;  %v792_v31 = vadd.f32 %v791_v25, %v751_v29 }
 0x191   : > { %v830_v32 = vadd.f32 %v829_v30, %v792_v31 }
 0x193   : > { %v864_v34 = vadd.f32 %v863_v1, %v830_v32 }
 0x194   : > { %v755_v36 = vpop.f32.mrf.mxu0  ;;  %v833_v41 = vpop.f32.mrf.mxu2 }
 0x195   : > { %v876_v37 = vadd.f32 %v963_v4, %v864_v34  ;;  %v756_v38 = vadd.f32 %v755_v36, %v717_v33 }
 0x196   : > { %v867_v43 = vpop.f32.mrf.mxu3 }
 0x197   : > { %880 = vst.msk [vmem:[%s1165_s5 + $0x10] sm:$0xff] %vm213_vm0, %v876_v37  ;;  %v798_v40 = vadd.f32 %v797_v39, %v756_v38 }
 0x199   : > { %v834_v42 = vadd.f32 %v833_v41, %v798_v40 }
 0x19b   : > { %v868_v44 = vadd.f32 %v867_v43, %v834_v42 }
 0x19d   : > { %v877_v45 = vadd.f32 %v963_v4, %v868_v44 }
 0x19f   : > { %881 = vst.msk [vmem:[%s1165_s5 + $0x18] sm:$0xff] %vm213_vm0, %v877_v45 }
 0x1a0 PF: > { %s14_s15 = sadd.s32 1, %s978_s15  }
 0x1a1   : > { %p11_p4 = scmp.ge.s32.totalorder %s14_s15, 6  }
 0x1a3   :  { %13 = sbr.rel (!%p11_p4) target bundleno = 1 (0x1), region = 67 }

</bundles_post_ra>
